<compile_context>
chip_gen: v7x
topology: tpu7x:2x2x1
jax: 0.10.0
libtpu: 0.0.40
codegen_flags: <defaults>
</compile_context>

<pallas_src>
import functools

import jax
import jax.numpy as jnp
from jax import lax
from jax.experimental import pallas as pl
from jax.experimental.pallas import tpu as pltpu

LANE = 128


def _conv_bn_silu_kernel(x_ref, w_ref, scale_ref, bias_ref, o_ref, *, kh, tile_h):
    # x_ref:     (tile_h + kh - 1, W, kw*Cin)  bf16  H-halo tile, kw-unfolded
    # w_ref:     (kh, kw*Cin, tile_co)         bf16
    # scale_ref: (1, tile_co)  f32  folded BN scale = gamma / sqrt(var + eps)
    # bias_ref:  (1, tile_co)  f32  folded BN bias  = beta - mean * scale
    # o_ref:     (tile_h, W, tile_co)          f32
    _, w, kc = x_ref.shape
    tile_co = o_ref.shape[-1]

    acc = jnp.zeros((tile_h * w, tile_co), dtype=jnp.float32)
    for dy in range(kh):                      # static, unrolled (kh == 3)
        # leading-axis slice only -> no W-crossing copy; K = kw*Cin per matmul
        patch = x_ref[dy:dy + tile_h, :, :].reshape(tile_h * w, kc)
        acc = acc + jnp.dot(patch, w_ref[dy],
                            preferred_element_type=jnp.float32)

    # folded BatchNorm (per-output-channel affine) + SiLU, all in f32
    y = acc * scale_ref[...] + bias_ref[...]
    y = y * jax.nn.sigmoid(y)
    o_ref[...] = y.reshape(tile_h, w, tile_co).astype(o_ref.dtype)


def _pick_tiles(h, w, cin, cout_p, kh, kw, budget_bytes=24 * 1024 * 1024):
    """Largest H-tile (divisor of H) whose double-buffered blocks fit a VMEM budget."""
    tile_co = 256 if cout_p % 256 == 0 else LANE
    kc = kw * cin
    w_blk = kh * kc * tile_co * 2                       # bf16 weights block
    tile_h = 1
    for d in range(1, h + 1):
        if h % d:
            continue
        x_blk = (d + kh - 1) * w * kc * 2               # bf16 halo tile
        o_blk = d * w * tile_co * 4                     # f32 output tile
        if 2 * (x_blk + o_blk + w_blk) <= budget_bytes:
            tile_h = d
    return tile_h, tile_co


def conv_bn_silu(x_nchw, weight, bn_gamma, bn_beta, bn_mean, bn_var, *, eps=1e-5):
    """x_nchw: (N, Cin, H, W); weight: (Cout, Cin, KH, KW).  stride=1, pad=k//2."""
    n, cin, h, w = x_nchw.shape
    cout, cin_w, kh, kw = weight.shape
    assert cin == cin_w
    assert kh % 2 == 1 and kw % 2 == 1, "autopad(k, None)=k//2 assumes odd k"
    ph, pw = kh // 2, kw // 2
    # TODO(synk): only stride=1 (the module default) is implemented.

    cout_p = ((cout + LANE - 1) // LANE) * LANE          # lane-dense output channels
    tile_h, tile_co = _pick_tiles(h, w, cin, cout_p, kh, kw)
    n_ht = h // tile_h
    n_co = cout_p // tile_co
    th_halo = tile_h + kh - 1
    kc = kw * cin

    # ---- wrapper-side layout prep (plain JAX) ----
    # NCHW -> NHWC, bf16 matmul inputs, zero-pad H/W borders.
    x_nhwc = jnp.transpose(x_nchw, (0, 2, 3, 1)).astype(jnp.bfloat16)
    x_pad = jnp.pad(x_nhwc, ((0, 0), (ph, ph), (pw, pw), (0, 0)))
    # kw-unfold + overlapping H-halo tiles in one expression:
    # (N, n_ht, tile_h + kh - 1, W, kw*Cin).
    # TODO(synk): express the halo via element-offset index maps instead of
    # materializing overlapping tiles (saves the (kh-1)/tile_h duplicated bytes).
    x_tiles = jnp.stack(
        [jnp.concatenate(
            [x_pad[:, i * tile_h:i * tile_h + th_halo, dx:dx + w, :]
             for dx in range(kw)], axis=-1)
         for i in range(n_ht)],
        axis=1)

    # Weights (Cout, Cin, KH, KW) -> (kh, kw*Cin, Cout_p), bf16.
    w_taps = jnp.transpose(weight, (2, 3, 1, 0)).reshape(kh, kw * cin, cout)
    w_taps = jnp.pad(w_taps, ((0, 0), (0, 0), (0, cout_p - cout)))
    w_taps = w_taps.astype(jnp.bfloat16)

    # Folded BatchNorm params (f32, padded channels -> 0 so SiLU(0)=0).
    scale = bn_gamma * lax.rsqrt(bn_var + eps)
    bias = bn_beta - bn_mean * scale
    scale = jnp.pad(scale, (0, cout_p - cout)).reshape(1, cout_p).astype(jnp.float32)
    bias = jnp.pad(bias, (0, cout_p - cout)).reshape(1, cout_p).astype(jnp.float32)

    # VMEM limit from the actual double-buffered footprint, with headroom,
    # clamped to stay within v7x's 64 MiB physical VMEM.
    x_blk = th_halo * w * kc * 2
    w_blk = kh * kc * tile_co * 2
    o_blk = tile_h * w * tile_co * 4
    need = 2 * (x_blk + w_blk + o_blk) + 4 * tile_co * 4
    vmem_limit = int(min(max(need * 3 // 2 + (1 << 20), 16 << 20), 48 << 20))

    out_nhwc = pl.pallas_call(
        functools.partial(_conv_bn_silu_kernel, kh=kh, tile_h=tile_h),
        out_shape=jax.ShapeDtypeStruct((n, h, w, cout_p), jnp.float32),
        grid_spec=pl.GridSpec(
            grid=(n, n_ht, n_co),
            in_specs=[
                # x halo tile; index map ignores the innermost Cout axis so the
                # block stays resident across it.
                pl.BlockSpec((None, None, th_halo, w, kc),
                             lambda ni, hi, ci: (ni, hi, 0, 0, 0)),
                pl.BlockSpec((kh, kc, tile_co), lambda ni, hi, ci: (0, 0, ci)),
                pl.BlockSpec((1, tile_co), lambda ni, hi, ci: (0, ci)),
                pl.BlockSpec((1, tile_co), lambda ni, hi, ci: (0, ci)),
            ],
            out_specs=pl.BlockSpec((None, tile_h, w, tile_co),
                                   lambda ni, hi, ci: (ni, hi, 0, ci)),
        ),
        compiler_params=pltpu.CompilerParams(
            dimension_semantics=("parallel", "parallel", "arbitrary"),
            vmem_limit_bytes=vmem_limit),
    )(x_tiles, w_taps, scale, bias)

    # strip Cout padding, back to PyTorch NCHW.
    return jnp.transpose(out_nhwc[..., :cout], (0, 3, 1, 2))


def _reference(x_nchw, weight, gamma, beta, mean, var, eps=1e-5):
    # Reference with the same bf16-rounded matmul inputs, f32 accumulation.
    xb = x_nchw.astype(jnp.bfloat16).astype(jnp.float32)
    wb = weight.astype(jnp.bfloat16).astype(jnp.float32)
    kh, kw = weight.shape[2], weight.shape[3]
    x_nhwc = jnp.transpose(xb, (0, 2, 3, 1))
    w_hwio = jnp.transpose(wb, (2, 3, 1, 0))
    y = lax.conv_general_dilated(
        x_nhwc, w_hwio, window_strides=(1, 1),
        padding=((kh // 2, kh // 2), (kw // 2, kw // 2)),
        dimension_numbers=("NHWC", "HWIO", "NHWC"))
    scale = gamma * lax.rsqrt(var + eps)
    y = y * scale + (beta - mean * scale)
    y = y * jax.nn.sigmoid(y)
    return jnp.transpose(y, (0, 3, 1, 2))


if __name__ == "__main__":
    key = jax.random.PRNGKey(0)
    k_x, k_w, k_g, k_b, k_m, k_v = jax.random.split(key, 6)

    N, Cin, Cout, H, W, K = 2, 4, 8, 16, 16, 3

    x = jax.random.normal(k_x, (N, Cin, H, W), dtype=jnp.float32)
    weight = jax.random.normal(k_w, (Cout, Cin, K, K), dtype=jnp.float32) * 0.1
    gamma = 1.0 + 0.1 * jax.random.normal(k_g, (Cout,), dtype=jnp.float32)
    beta = 0.1 * jax.random.normal(k_b, (Cout,), dtype=jnp.float32)
    run_mean = 0.1 * jax.random.normal(k_m, (Cout,), dtype=jnp.float32)
    run_var = jnp.abs(jax.random.normal(k_v, (Cout,), dtype=jnp.float32)) + 0.5

    out = conv_bn_silu(x, weight, gamma, beta, run_mean, run_var)
    out = jax.block_until_ready(out)

    ref = _reference(x, weight, gamma, beta, run_mean, run_var)
    assert out.shape == (N, Cout, H, W)
    assert jnp.allclose(out, ref, atol=2e-3, rtol=2e-3), "mismatch vs JAX reference"

    print("KERNEL_OK")
</pallas_src>

<mosaic_0001>
module attributes {stable_mosaic.version = 11 : i64} {
  func.func @_conv_bn_silu_kernel(%arg0: i32, %arg1: i32, %arg2: i32, %arg3: memref<1x1x18x16x12xbf16, #tpu.memory_space<vmem>>, %arg4: memref<3x12x128xbf16, #tpu.memory_space<vmem>>, %arg5: memref<1x128xf32, #tpu.memory_space<vmem>>, %arg6: memref<1x128xf32, #tpu.memory_space<vmem>>, %arg7: memref<1x16x16x128xf32, #tpu.memory_space<vmem>>) attributes {dimension_semantics = [#tpu.dimension_semantics<parallel>, #tpu.dimension_semantics<parallel>, #tpu.dimension_semantics<arbitrary>], iteration_bounds = array<i64: 2, 1, 1>, scalar_prefetch = 0 : i64, scratch_operands = 0 : i64, tpu.core_type = #tpu.core_type<tc>, window_params = [{transform_indices = @transform_0, window_bounds = array<i64: 1, 1, 18, 16, 12>}, {transform_indices = @transform_1, window_bounds = array<i64: 3, 12, 128>}, {transform_indices = @transform_2, window_bounds = array<i64: 1, 128>}, {transform_indices = @transform_3, window_bounds = array<i64: 1, 128>}, {transform_indices = @transform_4, window_bounds = array<i64: 1, 16, 16, 128>}]} {
    %cst = arith.constant 0.000000e+00 : f32
    %0 = vector.broadcast %cst : f32 to vector<256x128xf32>
    %c0 = arith.constant 0 : index
    %c0_0 = arith.constant 0 : index
    %c0_1 = arith.constant 0 : index
    %c0_2 = arith.constant 0 : index
    %c0_3 = arith.constant 0 : index
    %1 = vector.load %arg3[%c0, %c0_0, %c0_1, %c0_2, %c0_3] : memref<1x1x18x16x12xbf16, #tpu.memory_space<vmem>>, vector<1x1x16x16x12xbf16>
    %2 = vector.shape_cast %1 : vector<1x1x16x16x12xbf16> to vector<16x16x12xbf16>
    %3 = vector.shape_cast %2 : vector<16x16x12xbf16> to vector<256x12xbf16>
    %c0_4 = arith.constant 0 : index
    %c0_5 = arith.constant 0 : index
    %c0_6 = arith.constant 0 : index
    %4 = vector.load %arg4[%c0_4, %c0_5, %c0_6] : memref<3x12x128xbf16, #tpu.memory_space<vmem>>, vector<1x12x128xbf16>
    %5 = vector.shape_cast %4 : vector<1x12x128xbf16> to vector<12x128xbf16>
    %cst_7 = arith.constant dense<0.000000e+00> : vector<256x128xf32>
    %6 = tpu.matmul %3, %5, %cst_7 {dimension_numbers = #tpu.dot_dimension_numbers<[1], [0], [0], [1], [0, 0, 1, 1], [], []>} : vector<256x12xbf16>, vector<12x128xbf16>, vector<256x128xf32> -> vector<256x128xf32>
    %7 = arith.addf %0, %6 : vector<256x128xf32>
    %c0_8 = arith.constant 0 : index
    %c0_9 = arith.constant 0 : index
    %c1 = arith.constant 1 : index
    %c0_10 = arith.constant 0 : index
    %c0_11 = arith.constant 0 : index
    %8 = vector.load %arg3[%c0_8, %c0_9, %c1, %c0_10, %c0_11] : memref<1x1x18x16x12xbf16, #tpu.memory_space<vmem>>, vector<1x1x16x16x12xbf16>
    %9 = vector.shape_cast %8 : vector<1x1x16x16x12xbf16> to vector<16x16x12xbf16>
    %10 = vector.shape_cast %9 : vector<16x16x12xbf16> to vector<256x12xbf16>
    %c1_12 = arith.constant 1 : index
    %c0_13 = arith.constant 0 : index
    %c0_14 = arith.constant 0 : index
    %11 = vector.load %arg4[%c1_12, %c0_13, %c0_14] : memref<3x12x128xbf16, #tpu.memory_space<vmem>>, vector<1x12x128xbf16>
    %12 = vector.shape_cast %11 : vector<1x12x128xbf16> to vector<12x128xbf16>
    %cst_15 = arith.constant dense<0.000000e+00> : vector<256x128xf32>
    %13 = tpu.matmul %10, %12, %cst_15 {dimension_numbers = #tpu.dot_dimension_numbers<[1], [0], [0], [1], [0, 0, 1, 1], [], []>} : vector<256x12xbf16>, vector<12x128xbf16>, vector<256x128xf32> -> vector<256x128xf32>
    %14 = arith.addf %7, %13 : vector<256x128xf32>
    %c0_16 = arith.constant 0 : index
    %c0_17 = arith.constant 0 : index
    %c2 = arith.constant 2 : index
    %c0_18 = arith.constant 0 : index
    %c0_19 = arith.constant 0 : index
    %15 = vector.load %arg3[%c0_16, %c0_17, %c2, %c0_18, %c0_19] : memref<1x1x18x16x12xbf16, #tpu.memory_space<vmem>>, vector<1x1x16x16x12xbf16>
    %16 = vector.shape_cast %15 : vector<1x1x16x16x12xbf16> to vector<16x16x12xbf16>
    %17 = vector.shape_cast %16 : vector<16x16x12xbf16> to vector<256x12xbf16>
    %c2_20 = arith.constant 2 : index
    %c0_21 = arith.constant 0 : index
    %c0_22 = arith.constant 0 : index
    %18 = vector.load %arg4[%c2_20, %c0_21, %c0_22] : memref<3x12x128xbf16, #tpu.memory_space<vmem>>, vector<1x12x128xbf16>
    %19 = vector.shape_cast %18 : vector<1x12x128xbf16> to vector<12x128xbf16>
    %cst_23 = arith.constant dense<0.000000e+00> : vector<256x128xf32>
    %20 = tpu.matmul %17, %19, %cst_23 {dimension_numbers = #tpu.dot_dimension_numbers<[1], [0], [0], [1], [0, 0, 1, 1], [], []>} : vector<256x12xbf16>, vector<12x128xbf16>, vector<256x128xf32> -> vector<256x128xf32>
    %21 = arith.addf %14, %20 : vector<256x128xf32>
    %c0_24 = arith.constant 0 : index
    %c0_25 = arith.constant 0 : index
    %22 = vector.load %arg5[%c0_24, %c0_25] : memref<1x128xf32, #tpu.memory_space<vmem>>, vector<1x128xf32>
    %23 = vector.broadcast %22 : vector<1x128xf32> to vector<256x128xf32>
    %24 = arith.mulf %21, %23 : vector<256x128xf32>
    %c0_26 = arith.constant 0 : index
    %c0_27 = arith.constant 0 : index
    %25 = vector.load %arg6[%c0_26, %c0_27] : memref<1x128xf32, #tpu.memory_space<vmem>>, vector<1x128xf32>
    %26 = vector.broadcast %25 : vector<1x128xf32> to vector<256x128xf32>
    %27 = arith.addf %24, %26 : vector<256x128xf32>
    %28 = arith.negf %27 : vector<256x128xf32>
    %29 = math.exp %28 : vector<256x128xf32>
    %cst_28 = arith.constant 1.000000e+00 : f32
    %30 = vector.broadcast %cst_28 : f32 to vector<256x128xf32>
    %31 = arith.addf %30, %29 : vector<256x128xf32>
    %32 = arith.divf %30, %31 : vector<256x128xf32>
    %33 = arith.mulf %27, %32 : vector<256x128xf32>
    %34 = vector.shape_cast %33 : vector<256x128xf32> to vector<16x16x128xf32>
    %c0_29 = arith.constant 0 : index
    %c0_30 = arith.constant 0 : index
    %c0_31 = arith.constant 0 : index
    %c0_32 = arith.constant 0 : index
    %35 = vector.load %arg7[%c0_29, %c0_30, %c0_31, %c0_32] : memref<1x16x16x128xf32, #tpu.memory_space<vmem>>, vector<1x16x16x128xf32>
    %36 = vector.shape_cast %35 : vector<1x16x16x128xf32> to vector<16x16x128xf32>
    %37 = vector.shape_cast %34 : vector<16x16x128xf32> to vector<1x16x16x128xf32>
    tpu.vector_store %arg7[%c0_29, %c0_30, %c0_31, %c0_32], %37 {strides = array<i32>} : memref<1x16x16x128xf32, #tpu.memory_space<vmem>>, vector<1x16x16x128xf32>,
    return
  }
  func.func @transform_0(%arg0: i32, %arg1: i32, %arg2: i32) -> (i32, i32, i32, i32, i32) {
    %c0_i32 = arith.constant 0 : i32
    %c0_i32_0 = arith.constant 0 : i32
    %c0_i32_1 = arith.constant 0 : i32
    %c0_i32_2 = arith.constant 0 : i32
    return %arg0, %arg1, %c0_i32, %c0_i32_0, %c0_i32_1 : i32, i32, i32, i32, i32
  }
  func.func @transform_1(%arg0: i32, %arg1: i32, %arg2: i32) -> (i32, i32, i32) {
    %c0_i32 = arith.constant 0 : i32
    %c0_i32_0 = arith.constant 0 : i32
    %c0_i32_1 = arith.constant 0 : i32
    return %c0_i32, %c0_i32_0, %arg2 : i32, i32, i32
  }
  func.func @transform_2(%arg0: i32, %arg1: i32, %arg2: i32) -> (i32, i32) {
    %c0_i32 = arith.constant 0 : i32
    %c0_i32_0 = arith.constant 0 : i32
    return %c0_i32, %arg2 : i32, i32
  }
  func.func @transform_3(%arg0: i32, %arg1: i32, %arg2: i32) -> (i32, i32) {
    %c0_i32 = arith.constant 0 : i32
    %c0_i32_0 = arith.constant 0 : i32
    return %c0_i32, %arg2 : i32, i32
  }
  func.func @transform_4(%arg0: i32, %arg1: i32, %arg2: i32) -> (i32, i32, i32, i32) {
    %c0_i32 = arith.constant 0 : i32
    %c0_i32_0 = arith.constant 0 : i32
    return %arg0, %arg1, %c0_i32, %arg2 : i32, i32, i32, i32
  }
}

</mosaic_0001>

<bundles_post_ra>
// kernel: tpu_custom_call.1
= control target key start
LH: loop header
LB: loop body
LE: loop exit
PB: predicated region body
PF: predicated region fallthrough
CT: control target
= control target key end

     0   :  { %9 = vsyncpa [#allocation3], 0  ;;  %s3061_s0 = inlined_call_operand.vmem [shape: bf16[2,1,18,16,12], index: 0, kind: input, shape index: {}]   ;;  %s3062_s1 = inlined_call_operand.vmem [shape: bf16[3,12,128], index: 1, kind: input, shape index: {}]   ;;  %s3063_s2 = inlined_call_operand.vmem [shape: f32[1,128], index: 2, kind: input, shape index: {}]   ;;  %s3064_s3 = inlined_call_operand.vmem [shape: f32[1,128], index: 3, kind: input, shape index: {}]   ;;  %s3065_s4 = inlined_call_operand.hbm [shape: f32[2,16,16,128], index: 4, kind: output, shape index: {}]  }
   0x1   :  { %11 = vsyncpa [#allocation3 + $0x1], 0  ;;  %s2573_s15 = smov 0   ;;  %s2575_s16 = smov 0  }
   0x2   :  { %s2577_s17 = smov 0   ;;  %s2579_s18 = smov 0  }
   0x3   :  { %s2581_s19 = smov 0   ;;  %s2583_s20 = smov 0  }
   0x4 LB: > { %s1788_s21 = sadd.s32 4294967295, %s2543_s20   ;;  %s1789_s22 = sadd.s32 4294967294, %s2543_s20   ;;  %s2543_s20 = sphi %s2583_s20, %s17_s20   ;;  %s2539_s19 = sphi %s2581_s19, %s3072_s19   ;;  %s2535_s18 = sphi %s2579_s18, %s3071_s18   ;;  %s2531_s17 = sphi %s2577_s17, %s3070_s17   ;;  %s2527_s16 = sphi %s2575_s16, %s3069_s16   ;;  %s2523_s15 = sphi %s2573_s15, %s3068_s15  }
   0x5   : > { %s36_s23 = sadd.s32 1, %s2539_s19  ;;  %s153_s24 = sadd.s32 1, %s2531_s17 }
   0x6   : > { %p38_p0 = scmp.ge.s32.totalorder %s36_s23, 2  ;;  %p163_p1 = scmp.ne.s32.totalorder %s2531_s17, %s2527_s16 }
   0x7   : > { %p164_p2 = scmp.eq.s32.totalorder %s1788_s21, 1  ;;  %p169_p3 = scmp.ne.s32.totalorder %s2527_s16, %s2523_s15 }
   0x8   : > { %s3074_s23 = smov (%p38_p0, %s36_s23), 0  ;;  %p170_p5 = scmp.eq.s32.totalorder %s1789_s22, 1 }
   0x9   : > { %p2613_p4 = por %p164_p2, %p163_p1  ;;  %s146_s26 = ssub.s32 %s2539_s19, %s3074_s23 }
   0xa   : > { %p1795_p6 = scmp.ge.s32.totalorder %s2543_s20, 1  ;;  %p151_p7 = scmp.eq.s32.totalorder %s146_s26, 0 }
   0xb   : > { %p2620_p8 = por %p170_p5, %p169_p3  ;;  %p219_p9 = scmp.lt.s32.totalorder %s2543_s20, 3 }
   0xc   : > { %s2626_s28 = scalar_select %p151_p7, %s2531_s17, %s153_s24  }
   0xd   : > { %p220_p10 = pnand %p1795_p6, %p219_p9 }
   0xe   : > { %v2286_v0 = vld [vmem:[%s3062_s1 + $0x8] sm:$0x3f] (!%p220_p10)   ;;  %vm484_vm0 = vcmask (!%p220_p10), 1045504   ;;  %p259_p11 = scmp.lt.s32.totalorder (!%p220_p10), %s2535_s18, 1  ;;  %v2287_v1 = vld [vmem:[%s3062_s1] sm:$0x3f] (!%p220_p10)  }
   0xf   : > { %223 = sbr.rel (%p220_p10) target bundleno = 387 (0x183), region = 36  ;;  %2224 = vmatprep.subr.msk.bf16.mxu1 (!%p220_p10), %vm484_vm0, %v2286_v0  ;;  %v486_v2 = vsel (!%p220_p10), %vm484_vm0, %v2286_v0, 0  ;;  %v2290_v3 = vld [vmem:[%s3062_s1 + $0x10] sm:$0x3f] (!%p220_p10)   ;;  %2225 = vmatprep.subr.msk.bf16.mxu0 (!%p220_p10), %vm484_vm0, %v2287_v1  ;;  %v783_v4 = vsel (!%p220_p10), %vm484_vm0, %v2287_v1, 0  ;;  %vm435_vm1 = vcmask (!%p220_p10), 97280  }
  0x10   : > { %2057 = vmatpush3.bf16.msra.mxu1 (!%p220_p10), %v486_v2  ;;  %2091 = vmatpush3.bf16.msra.mxu0 (!%p220_p10), %v783_v4  ;;  %v1116_v9 = vsel (!%p220_p10), %vm484_vm0, %v2290_v3, 0  ;;  %s256_s26 = sand.u32 (!%p220_p10), 1, %s2527_s16   ;;  %s2004_s5 = sshll.u32 (!%p220_p10), %s2535_s18, 12 }
  0x11   : > { %2226 = vmatprep.subr.msk.bf16.mxu1 (!%p220_p10), %vm484_vm0, %v2287_v1  ;;  %2227 = vmatprep.subr.msk.bf16.mxu0 (!%p220_p10), %vm484_vm0, %v2290_v3  ;;  %s2837_s29 = sshll.u32 (!%p220_p10), %s256_s26, 8  ;;  %s3005_s9 = scalar_lea.hbm (!%p220_p10), %s3065_s4, %s2004_s5 }
  0x12   : > { %s2860_s30 = scalar_lea.vmem (!%p220_p10), [#allocation2], %s2837_s29  ;;  %s2545_s11 = smov (!%p220_p10), [#allocation2]  }
  0x13   : > { %s1663_s6 = sshll.u32 (!%p220_p10), %s2860_s30, 4  ;;  %s2469_s12 = sshll.u32 (!%p220_p10), %s2545_s11, 4  ;;  %s3007_s6 = int_to_ptr.vmem [resolvable:$true] %s1663_s6  ;;  %s2470_s12 = int_to_ptr.vmem [resolvable:$false] %s2469_s12 }
  0x14   : > { %p2472_p1 = scmp.lt.s32.totalorder (!%p220_p10), %s3007_s6, %s2470_s12 }
  0x16   : > { %s260_s7 = scalar_select %p259_p11, %s2535_s18, 1 }
  0x17   : > { %s3015_s18 = scalar_lea.sflag [#allocation3], %s256_s26 }
  0x18   : > { %s2228_s10 = smul.u32 144, %s260_s7 }
  0x1a   : > { %s2648_s13 = scalar_lea.vmem %s3061_s0, %s2228_s10  ;;  %s2465_s10 = scalar_lea.vmem %s3007_s6, 4096 }
  0x1b   : > { %v2288_v5 = vld [vmem:[%s2648_s13 + $0x8] sm:$0xff]   ;;  %v2289_v6 = vld [vmem:[%s2648_s13] sm:$0xff]   ;;  %v2291_v7 = vld [vmem:[%s2648_s13 + $0x10] sm:$0xff]   ;;  %p2466_p12 = scmp.ne.s32.totalorder %s3007_s6, %s2465_s10 }
  0x1c   : > { %2058 = vmatprep.mubr.msk.bf16.mxu1 %vm435_vm1, %v2288_v5  ;;  %2092 = vmatprep.mubr.msk.bf16.mxu0 %vm435_vm1, %v2289_v6  ;;  %v2292_v8 = vld [vmem:[%s2648_s13 + $0x8] sm:$0xff]   ;;  %v2293_v10 = vld [vmem:[%s2648_s13 + $0x18] sm:$0xff]   ;;  %v2294_v11 = vld [vmem:[%s2648_s13 + $0x10] sm:$0xff]  }
  0x1d   : > { %2059 = vmatmul.mubr.msk.bf16.vlgmr.msra.gmra.mrb[0].mxu1 %vm435_vm1, %v2291_v7  ;;  %2093 = vmatmul.mubr.msk.bf16.vlgmr.msra.gmra.mrb[0].mxu0 %vm435_vm1, %v2292_v8  ;;  %v2295_v12 = vld [vmem:[%s2648_s13 + $0x20] sm:$0xff]   ;;  %v2296_v13 = vld [vmem:[%s2648_s13 + $0x18] sm:$0xff]   ;;  %v2297_v14 = vld [vmem:[%s2648_s13 + $0x28] sm:$0xff]   ;;  %p2467_p13 = pnand %p2466_p12, %p2613_p4 }
  0x1e   : > { %2159 = vmatpush3.bf16.msra.mxu1 %v783_v4  ;;  %2125 = vmatpush3.bf16.msra.mxu0 %v1116_v9  ;;  %v2298_v15 = vld [vmem:[%s2648_s13 + $0x20] sm:$0xff]   ;;  %v2299_v16 = vld [vmem:[%s2648_s13 + $0x30] sm:$0xff]   ;;  %v2300_v17 = vld [vmem:[%s2648_s13 + $0x28] sm:$0xff]  }
  0x1f   : > { %2062 = vmatprep.mubr.msk.bf16.mxu1 %vm435_vm1, %v2293_v10  ;;  %2096 = vmatprep.mubr.msk.bf16.mxu0 %vm435_vm1, %v2294_v11  ;;  %v2301_v18 = vld [vmem:[%s2648_s13 + $0x38] sm:$0xff]   ;;  %v2302_v19 = vld [vmem:[%s2648_s13 + $0x30] sm:$0xff]   ;;  %v2303_v20 = vld [vmem:[%s2648_s13 + $0x40] sm:$0xff]   ;;  %p2468_p0 = pneg %p2467_p13 }
  0x20   : > { %v2304_v21 = vld [vmem:[%s2648_s13 + $0x38] sm:$0xff]   ;;  %v2305_v22 = vld [vmem:[%s2648_s13 + $0x48] sm:$0xff]   ;;  %v2306_v23 = vld [vmem:[%s2648_s13 + $0x10] sm:$0xff]  }
  0x21   : > { %v2307_v24 = vld [vmem:[%s2648_s13 + $0x50] sm:$0xff]   ;;  %v2308_v25 = vld [vmem:[%s2648_s13 + $0x18] sm:$0xff]   ;;  %v2310_v27 = vld [vmem:[%s2648_s13 + $0x20] sm:$0xff]  }
  0x22   : > { %v2309_v26 = vld [vmem:[%s2648_s13 + $0x58] sm:$0xff]   ;;  %v2311_v28 = vld [vmem:[%s2648_s13 + $0x60] sm:$0xff]   ;;  %v2312_v29 = vld [vmem:[%s2648_s13 + $0x28] sm:$0xff]  }
  0x23   : > { %v2313_v30 = vld [vmem:[%s2648_s13 + $0x68] sm:$0xff]   ;;  %v2314_v31 = vld [vmem:[%s2648_s13 + $0x30] sm:$0xff]   ;;  %v2316_v33 = vld [vmem:[%s2648_s13 + $0x38] sm:$0xff]  }
  0x24   : > { %v2315_v32 = vld [vmem:[%s2648_s13 + $0x70] sm:$0xff]   ;;  %v2317_v34 = vld [vmem:[%s2648_s13 + $0x78] sm:$0xff]   ;;  %v2318_v35 = vld [vmem:[%s2648_s13 + $0x40] sm:$0xff]  }
  0x25   : > { %2063 = vmatmul.mubr.msk.bf16.gmra.mrb[4].mxu1 %vm435_vm1, %v2295_v12  ;;  %2097 = vmatmul.mubr.msk.bf16.gmra.mrb[4].mxu0 %vm435_vm1, %v2296_v13  ;;  %v2319_v36 = vld [vmem:[%s2648_s13 + $0x80] sm:$0xff]   ;;  %v2320_v37 = vld [vmem:[%s2648_s13 + $0x48] sm:$0xff]   ;;  %v2322_v39 = vld [vmem:[%s2648_s13 + $0x50] sm:$0xff]  }
  0x26   : > { %2066 = vmatprep.mubr.msk.bf16.mxu1 %vm435_vm1, %v2297_v14  ;;  %2100 = vmatprep.mubr.msk.bf16.mxu0 %vm435_vm1, %v2298_v15  ;;  %v2321_v38 = vld [vmem:[%s2648_s13 + $0x40] sm:$0xff]   ;;  %v2323_v40 = vld [vmem:[%s2648_s13 + $0x48] sm:$0xff]   ;;  %v2324_v41 = vld [vmem:[%s2648_s13 + $0x58] sm:$0xff]  }
  0x27   : > { %v2325_v42 = vld [vmem:[%s2648_s13 + $0x50] sm:$0xff]   ;;  %v2326_v43 = vld [vmem:[%s2648_s13 + $0x60] sm:$0xff]   ;;  %v2327_v44 = vld [vmem:[%s2648_s13 + $0x58] sm:$0xff]  }
  0x28   : > { %v2328_v45 = vld [vmem:[%s2648_s13 + $0x68] sm:$0xff]   ;;  %v2329_v46 = vld [vmem:[%s2648_s13 + $0x60] sm:$0xff]   ;;  %v2330_v47 = vld [vmem:[%s2648_s13 + $0x70] sm:$0xff]  }
  0x29   : > { %v2331_v48 = vld [vmem:[%s2648_s13 + $0x68] sm:$0xff]   ;;  %v2332_v49 = vld [vmem:[%s2648_s13 + $0x78] sm:$0xff]   ;;  %v2333_v50 = vld [vmem:[%s2648_s13 + $0x70] sm:$0xff]  }
  0x2a   : > { %v2334_v51 = vld [vmem:[%s2648_s13 + $0x80] sm:$0xff]   ;;  %v2335_v52 = vld [vmem:[%s2648_s13 + $0x78] sm:$0xff]   ;;  %v2336_v53 = vld [vmem:[%s2648_s13 + $0x88] sm:$0xff]   ;;  %s2471_s13 = scalar_lea.vmem %s2470_s12, 8192 }
  0x2b   : > { %v2760_v7 = vld [vmem:[%s3063_s2] ss:$0 sm:$0xff]  ;;  %p2473_p2 = scmp.lt.s32.totalorder %s2471_s13, %s2465_s10 }
  0x2c   : > { %v2765_v10 = vld [vmem:[%s3064_s3] ss:$0 sm:$0xff] }
  0x2d   : > { %2067 = vmatmul.mubr.msk.bf16.gmra.mrb[8].mxu1 %vm435_vm1, %v2299_v16  ;;  %2101 = vmatmul.mubr.msk.bf16.gmra.mrb[8].mxu0 %vm435_vm1, %v2300_v17  ;;  %p2474_p3 = por %p2473_p2, %p2472_p1 }
  0x2e   : > { %2070 = vmatprep.mubr.msk.bf16.mxu1 %vm435_vm1, %v2301_v18  ;;  %2104 = vmatprep.mubr.msk.bf16.mxu0 %vm435_vm1, %v2302_v19 }
  0x2f   : > { %p2475_p5 = pnand %p2474_p3, %p2468_p0 }
  0x35   : > { %2071 = vmatmul.mubr.msk.bf16.gmra.mrb[12].mxu1 %vm435_vm1, %v2303_v20  ;;  %2105 = vmatmul.mubr.msk.bf16.gmra.mrb[12].mxu0 %vm435_vm1, %v2304_v21 }
  0x36   : > { %2074 = vmatprep.mubr.msk.bf16.mxu1 %vm435_vm1, %v2305_v22  ;;  %2126 = vmatprep.mubr.msk.bf16.mxu0 %vm435_vm1, %v2306_v23 }
  0x3d   : > { %2075 = vmatmul.mubr.msk.bf16.gmra.mrb[16].mxu1 %vm435_vm1, %v2307_v24  ;;  %2127 = vmatmul.mubr.msk.bf16.vlgmr.msra.gmra.mrb[0].mxu0 %vm435_vm1, %v2308_v25 }
  0x3e   : > { %2078 = vmatprep.mubr.msk.bf16.mxu1 %vm435_vm1, %v2309_v26  ;;  %2130 = vmatprep.mubr.msk.bf16.mxu0 %vm435_vm1, %v2310_v27 }
  0x45   : > { %2079 = vmatmul.mubr.msk.bf16.gmra.mrb[20].mxu1 %vm435_vm1, %v2311_v28  ;;  %2131 = vmatmul.mubr.msk.bf16.gmra.mrb[4].mxu0 %vm435_vm1, %v2312_v29 }
  0x46   : > { %2082 = vmatprep.mubr.msk.bf16.mxu1 %vm435_vm1, %v2313_v30  ;;  %2134 = vmatprep.mubr.msk.bf16.mxu0 %vm435_vm1, %v2314_v31 }
  0x4d   : > { %2083 = vmatmul.mubr.msk.bf16.gmra.mrb[24].mxu1 %vm435_vm1, %v2315_v32  ;;  %2135 = vmatmul.mubr.msk.bf16.gmra.mrb[8].mxu0 %vm435_vm1, %v2316_v33 }
  0x4e   : > { %2086 = vmatprep.mubr.msk.bf16.mxu1 %vm435_vm1, %v2317_v34  ;;  %2138 = vmatprep.mubr.msk.bf16.mxu0 %vm435_vm1, %v2318_v35 }
  0x55   : > { %2087 = vmatmul.mubr.msk.bf16.gmra.mrb[28].mxu1 %vm435_vm1, %v2319_v36  ;;  %2139 = vmatmul.mubr.msk.bf16.gmra.mrb[12].mxu0 %vm435_vm1, %v2320_v37 }
  0x56   : > { %2108 = vmatprep.mubr.msk.bf16.mxu1 %vm435_vm1, %v2321_v38  ;;  %2142 = vmatprep.mubr.msk.bf16.mxu0 %vm435_vm1, %v2322_v39 }
  0x5d   : > { %2109 = vmatmul.mubr.msk.bf16.vlgmr.msra.gmra.mrb[16].mxu1 %vm435_vm1, %v2323_v40  ;;  %2143 = vmatmul.mubr.msk.bf16.gmra.mrb[16].mxu0 %vm435_vm1, %v2324_v41 }
  0x5e   : > { %2112 = vmatprep.mubr.msk.bf16.mxu1 %vm435_vm1, %v2325_v42  ;;  %2146 = vmatprep.mubr.msk.bf16.mxu0 %vm435_vm1, %v2326_v43 }
  0x65   : > { %2113 = vmatmul.mubr.msk.bf16.gmra.mrb[20].mxu1 %vm435_vm1, %v2327_v44  ;;  %2147 = vmatmul.mubr.msk.bf16.gmra.mrb[20].mxu0 %vm435_vm1, %v2328_v45 }
  0x66   : > { %2116 = vmatprep.mubr.msk.bf16.mxu1 %vm435_vm1, %v2329_v46  ;;  %2150 = vmatprep.mubr.msk.bf16.mxu0 %vm435_vm1, %v2330_v47 }
  0x6d   : > { %2117 = vmatmul.mubr.msk.bf16.gmra.mrb[24].mxu1 %vm435_vm1, %v2331_v48  ;;  %2151 = vmatmul.mubr.msk.bf16.gmra.mrb[24].mxu0 %vm435_vm1, %v2332_v49 }
  0x6e   : > { %2120 = vmatprep.mubr.msk.bf16.mxu1 %vm435_vm1, %v2333_v50  ;;  %2154 = vmatprep.mubr.msk.bf16.mxu0 %vm435_vm1, %v2334_v51 }
  0x75   : > { %2121 = vmatmul.mubr.msk.bf16.gmra.mrb[28].mxu1 %vm435_vm1, %v2335_v52  ;;  %2155 = vmatmul.mubr.msk.bf16.gmra.mrb[28].mxu0 %vm435_vm1, %v2336_v53 }
  0xf0   : > { %v2060_v54 = vpop.f32.mrb[0].mxu1 }
  0xf1   : > { %v522_v55 = vpop.f32.mrb[1].mxu1 }
  0xf2   : > { %v2061_v56 = vpop.f32.mrb[2].mxu1 }
  0xf3   : > { %v525_v57 = vpop.f32.mrb[3].mxu1 }
  0xf8   : > { %v2064_v58 = vpop.f32.mrb[4].mxu1 }
  0xf9   : > { %v538_v59 = vpop.f32.mrb[5].mxu1 }
  0xfa   : > { %v2065_v60 = vpop.f32.mrb[6].mxu1 }
  0xfb   : > { %v541_v61 = vpop.f32.mrb[7].mxu1 }
 0x100   : > { %v2068_v62 = vpop.f32.mrb[8].mxu1 }
 0x101   : > { %v554_v63 = vpop.f32.mrb[9].mxu1 }
 0x102   : > { %v2069_v0 = vpop.f32.mrb[10].mxu1 }
 0x103   : > { %v2747_v1 = vpop.f32.mrb[11].mxu1 }
 0x108   : > { %v2749_v2 = vpop.f32.mrb[12].mxu1 }
 0x109   : > { %v2751_v3 = vpop.f32.mrb[13].mxu1 }
 0x10a   : > { %v2753_v4 = vpop.f32.mrb[14].mxu1 }
 0x10b   : > { %v2755_v5 = vpop.f32.mrb[15].mxu1 }
 0x110   : > { %v2128_v6 = vpop.f32.mrb[0].mxu0 }
 0x111   : > { %v2160_v8 = vadd.f32 %v2128_v6, %v2060_v54  ;;  %v1152_v9 = vpop.f32.mrb[1].mxu0 }
 0x112   : > { %v2161_v11 = vadd.f32 %v1152_v9, %v522_v55  ;;  %v2129_v12 = vpop.f32.mrb[2].mxu0 }
 0x113   : > { %v1320_v13 = vmul.f32 %v2160_v8, %v2760_v7  ;;  %v2162_v14 = vadd.f32 %v2129_v12, %v2061_v56  ;;  %v1155_v15 = vpop.f32.mrb[3].mxu0 }
 0x114   : > { %v1318_v16 = vmul.f32 %v2161_v11, %v2760_v7  ;;  %v2163_v17 = vadd.f32 %v1155_v15, %v525_v57 }
 0x115   : > { %v2770_v18 = vadd.f32 %v2765_v10, %v1320_v13  ;;  %v1321_v19 = vmul.f32 %v2162_v14, %v2760_v7 }
 0x116   : > { %v2774_v20 = vadd.f32 %v2765_v10, %v1318_v16  ;;  %v1319_v21 = vmul.f32 %v2163_v17, %v2760_v7 }
 0x117   : > { %v1969_v22 = vmul.f32 -1.442695, %v2770_v18  ;;  %v2779_v23 = vadd.f32 %v2765_v10, %v1321_v19 }
 0x118   : > { %v1967_v24 = vmul.f32 -1.442695, %v2774_v20  ;;  %v2783_v25 = vadd.f32 %v2765_v10, %v1319_v21  ;;  %v2132_v26 = vpop.f32.mrb[4].mxu0 }
 0x119   : > { %2337 = vpow2.f32 %v1969_v22  ;;  %v1970_v27 = vmul.f32 -1.442695, %v2779_v23  ;;  %v2164_v28 = vadd.f32 %v2132_v26, %v2064_v58  ;;  %v1168_v29 = vpop.f32.mrb[5].mxu0 }
 0x11a   : > { %2339 = vpow2.f32 %v1967_v24  ;;  %v1968_v30 = vmul.f32 -1.442695, %v2783_v25  ;;  %v2165_v31 = vadd.f32 %v1168_v29, %v538_v59  ;;  %v2133_v32 = vpop.f32.mrb[6].mxu0 }
 0x11b   : > { %2341 = vpow2.f32 %v1970_v27  ;;  %v1324_v33 = vmul.f32 %v2164_v28, %v2760_v7  ;;  %v2166_v34 = vadd.f32 %v2133_v32, %v2065_v60  ;;  %v1171_v35 = vpop.f32.mrb[7].mxu0 }
 0x11c   : > { %2343 = vpow2.f32 %v1968_v30  ;;  %v1322_v36 = vmul.f32 %v2165_v31, %v2760_v7  ;;  %v2167_v37 = vadd.f32 %v1171_v35, %v541_v61 }
 0x11d   : > { %v2790_v38 = vadd.f32 %v2765_v10, %v1324_v33  ;;  %v1325_v39 = vmul.f32 %v2166_v34, %v2760_v7 }
 0x11e   : > { %v2794_v40 = vadd.f32 %v2765_v10, %v1322_v36  ;;  %v1323_v41 = vmul.f32 %v2167_v37, %v2760_v7 }
 0x11f   : > { %v1973_v42 = vmul.f32 -1.442695, %v2790_v38  ;;  %v2799_v43 = vadd.f32 %v2765_v10, %v1325_v39 }
 0x120   : > { %v1971_v44 = vmul.f32 -1.442695, %v2794_v40  ;;  %v2803_v45 = vadd.f32 %v2765_v10, %v1323_v41  ;;  %v2136_v46 = vpop.f32.mrb[8].mxu0 }
 0x121   : > { %2345 = vpow2.f32 %v1973_v42  ;;  %v1974_v47 = vmul.f32 -1.442695, %v2799_v43  ;;  %v2168_v48 = vadd.f32 %v2136_v46, %v2068_v62  ;;  %v1184_v49 = vpop.f32.mrb[9].mxu0 }
 0x122   : > { %2347 = vpow2.f32 %v1971_v44  ;;  %v1972_v50 = vmul.f32 -1.442695, %v2803_v45  ;;  %v2169_v51 = vadd.f32 %v1184_v49, %v554_v63  ;;  %v2137_v52 = vpop.f32.mrb[10].mxu0 }
 0x123   : > { %v2338_v53 = vpop.eup %2337  ;;  %2349 = vpow2.f32 %v1974_v47  ;;  %v1328_v54 = vmul.f32 %v2168_v48, %v2760_v7  ;;  %v2170_v55 = vadd.f32 %v2137_v52, %v2069_v0  ;;  %v1187_v56 = vpop.f32.mrb[11].mxu0 }
 0x124   : > { %v2340_v57 = vpop.eup %2339  ;;  %v1487_v58 = vadd.f32 1.0, %v2338_v53  ;;  %2351 = vpow2.f32 %v1972_v50  ;;  %v1326_v59 = vmul.f32 %v2169_v51, %v2760_v7  ;;  %v2171_v60 = vadd.f32 %v1187_v56, %v2747_v1 }
 0x125   : > { %v2342_v61 = vpop.eup %2341  ;;  %v1485_v62 = vadd.f32 1.0, %v2340_v57  ;;  %v2811_v6 = vadd.f32 %v2765_v10, %v1328_v54  ;;  %v1329_v63 = vmul.f32 %v2170_v55, %v2760_v7 }
 0x126   : > { %v2344_v8 = vpop.eup %2343  ;;  %2353 = vrcp.f32 %v1487_v58  ;;  %v1488_v9 = vadd.f32 1.0, %v2342_v61  ;;  %v2815_v0 = vadd.f32 %v2765_v10, %v1326_v59  ;;  %v1327_v11 = vmul.f32 %v2171_v60, %v2760_v7 }
 0x127   : > { %2355 = vrcp.f32 %v1485_v62  ;;  %v1486_v12 = vadd.f32 1.0, %v2344_v8  ;;  %v1977_v1 = vmul.f32 -1.442695, %v2811_v6  ;;  %v2820_v13 = vadd.f32 %v2765_v10, %v1329_v63 }
 0x128   : > { %2357 = vrcp.f32 %v1488_v9  ;;  %v1975_v14 = vmul.f32 -1.442695, %v2815_v0  ;;  %v2824_v15 = vadd.f32 %v2765_v10, %v1327_v11  ;;  %v2140_v16 = vpop.f32.mrb[12].mxu0 }
 0x129   : > { %2359 = vrcp.f32 %v1486_v12  ;;  %v1978_v17 = vmul.f32 -1.442695, %v2820_v13  ;;  %v2172_v19 = vadd.f32 %v2140_v16, %v2749_v2  ;;  %v1200_v21 = vpop.f32.mrb[13].mxu0 }
 0x12a   : > { %2361 = vpow2.f32 %v1977_v1  ;;  %v1976_v22 = vmul.f32 -1.442695, %v2824_v15  ;;  %v2173_v24 = vadd.f32 %v1200_v21, %v2751_v3  ;;  %v2141_v26 = vpop.f32.mrb[14].mxu0 }
 0x12b   : > { %v2346_v27 = vpop.eup %2345  ;;  %2363 = vpow2.f32 %v1975_v14  ;;  %v1332_v28 = vmul.f32 %v2172_v19, %v2760_v7  ;;  %v2174_v29 = vadd.f32 %v2141_v26, %v2753_v4  ;;  %v1203_v30 = vpop.f32.mrb[15].mxu0 }
 0x12c   : > { %v2348_v31 = vpop.eup %2347  ;;  %v1491_v32 = vadd.f32 1.0, %v2346_v27  ;;  %2365 = vpow2.f32 %v1978_v17  ;;  %v1330_v2 = vmul.f32 %v2173_v24, %v2760_v7  ;;  %v2175_v33 = vadd.f32 %v1203_v30, %v2755_v5 }
 0x12d   : > { %v2350_v34 = vpop.eup %2349  ;;  %v1489_v3 = vadd.f32 1.0, %v2348_v31  ;;  %2367 = vpow2.f32 %v1976_v22  ;;  %v2840_v35 = vadd.f32 %v2765_v10, %v1332_v28  ;;  %v1333_v36 = vmul.f32 %v2174_v29, %v2760_v7 }
 0x12e   : > { %v2352_v4 = vpop.eup %2351  ;;  %2369 = vrcp.f32 %v1491_v32  ;;  %v1492_v37 = vadd.f32 1.0, %v2350_v34  ;;  %v2844_v39 = vadd.f32 %v2765_v10, %v1330_v2  ;;  %v1331_v41 = vmul.f32 %v2175_v33, %v2760_v7 }
 0x12f   : > { %2371 = vrcp.f32 %v1489_v3  ;;  %v1490_v5 = vadd.f32 1.0, %v2352_v4  ;;  %v1981_v42 = vmul.f32 -1.442695, %v2840_v35  ;;  %v2849_v44 = vadd.f32 %v2765_v10, %v1333_v36 }
 0x130   : > { %v2110_v46 = vpop.f32.mrb[16].mxu1  ;;  %v2354_v47 = vpop.eup %2353  ;;  %2373 = vrcp.f32 %v1492_v37  ;;  %v1979_v48 = vmul.f32 -1.442695, %v2844_v39  ;;  %v2853_v49 = vadd.f32 %v2765_v10, %v1331_v41 }
 0x131   : > { %v2144_v50 = vpop.f32.mrb[16].mxu0  ;;  %v883_v51 = vpop.f32.mrb[17].mxu1  ;;  %v1583_v53 = vmul.f32 %v2354_v47, %v2770_v18  ;;  %2375 = vrcp.f32 %v1490_v5  ;;  %v1982_v54 = vmul.f32 -1.442695, %v2849_v44 }
 0x132   : > { %v2356_v52 = vpop.eup %2355  ;;  %v2176_v55 = vadd.f32 %v2144_v50, %v2110_v46  ;;  %v1216_v56 = vpop.f32.mrb[17].mxu0  ;;  %2377 = vpow2.f32 %v1981_v42  ;;  %v1980_v60 = vmul.f32 -1.442695, %v2853_v49 }
 0x133   : > { %v2111_v57 = vpop.f32.mrb[18].mxu1  ;;  %v2358_v58 = vpop.eup %2357  ;;  %v1581_v59 = vmul.f32 %v2356_v52, %v2774_v20  ;;  %v2177_v61 = vadd.f32 %v1216_v56, %v883_v51  ;;  %1615 = vst [vmem:[%s2860_s30 + $0x10] sm:$0xff] %v1583_v53  ;;  %2379 = vpow2.f32 %v1979_v48 }
 0x134   : > { %v2145_v62 = vpop.f32.mrb[18].mxu0  ;;  %v886_v63 = vpop.f32.mrb[19].mxu1  ;;  %v1584_v18 = vmul.f32 %v2358_v58, %v2779_v23  ;;  %v1336_v9 = vmul.f32 %v2176_v55, %v2760_v7  ;;  %2381 = vpow2.f32 %v1982_v54 }
 0x135   : > { %v2360_v8 = vpop.eup %2359  ;;  %v2178_v20 = vadd.f32 %v2145_v62, %v2111_v57  ;;  %v1219_v11 = vpop.f32.mrb[19].mxu0  ;;  %1613 = vst [vmem:[%s2860_s30] sm:$0xff] %v1581_v59  ;;  %v1334_v14 = vmul.f32 %v2177_v61, %v2760_v7  ;;  %2383 = vpow2.f32 %v1980_v60 }
 0x136   : > { %v2362_v12 = vpop.eup %2361  ;;  %v1582_v1 = vmul.f32 %v2360_v8, %v2783_v25  ;;  %v2179_v16 = vadd.f32 %v1219_v11, %v886_v63  ;;  %1616 = vst [vmem:[%s2860_s30 + $0x18] sm:$0xff] %v1584_v18  ;;  %v2870_v23 = vadd.f32 %v2765_v10, %v1336_v9 }
 0x137   : > { %v2364_v17 = vpop.eup %2363  ;;  %v1495_v19 = vadd.f32 1.0, %v2362_v12  ;;  %v1337_v21 = vmul.f32 %v2178_v20, %v2760_v7  ;;  %v2875_v26 = vadd.f32 %v2765_v10, %v1334_v14 }
 0x138   : > { %v2366_v22 = vpop.eup %2365  ;;  %1614 = vst [vmem:[%s2860_s30 + $0x8] sm:$0xff] %v1582_v1  ;;  %v1493_v24 = vadd.f32 1.0, %v2364_v17  ;;  %v1335_v25 = vmul.f32 %v2179_v16, %v2760_v7  ;;  %v1985_v29 = vmul.f32 -1.442695, %v2870_v23  ;;  %v2114_v31 = vpop.f32.mrb[20].mxu1 }
 0x139   : > { %v2368_v27 = vpop.eup %2367  ;;  %2385 = vrcp.f32 %v1495_v19  ;;  %v1496_v28 = vadd.f32 1.0, %v2366_v22  ;;  %v2880_v30 = vadd.f32 %v2765_v10, %v1337_v21  ;;  %v1983_v33 = vmul.f32 -1.442695, %v2875_v26  ;;  %v2148_v3 = vpop.f32.mrb[20].mxu0 }
 0x13a   : > { %v2370_v32 = vpop.eup %2369  ;;  %2387 = vrcp.f32 %v1493_v24  ;;  %v1494_v2 = vadd.f32 1.0, %v2368_v27  ;;  %v2884_v34 = vadd.f32 %v2765_v10, %v1335_v25  ;;  %v899_v36 = vpop.f32.mrb[21].mxu1  ;;  %v2180_v5 = vadd.f32 %v2148_v3, %v2114_v31 }
 0x13b   : > { %v2372_v4 = vpop.eup %2371  ;;  %v1587_v37 = vmul.f32 %v2370_v32, %v2790_v38  ;;  %2389 = vrcp.f32 %v1496_v28  ;;  %v1986_v41 = vmul.f32 -1.442695, %v2880_v30  ;;  %v1232_v42 = vpop.f32.mrb[21].mxu0 }
 0x13c   : > { %v2115_v46 = vpop.f32.mrb[22].mxu1  ;;  %v2374_v47 = vpop.eup %2373  ;;  %v1585_v48 = vmul.f32 %v2372_v4, %v2794_v40  ;;  %2391 = vrcp.f32 %v1494_v2  ;;  %v1984_v50 = vmul.f32 -1.442695, %v2884_v34  ;;  %v2181_v51 = vadd.f32 %v1232_v42, %v899_v36 }
 0x13d   : > { %v2149_v52 = vpop.f32.mrb[22].mxu0  ;;  %v902_v53 = vpop.f32.mrb[23].mxu1  ;;  %1619 = vst [vmem:[%s2860_s30 + $0x30] sm:$0xff] %v1587_v37  ;;  %v1588_v38 = vmul.f32 %v2374_v47, %v2799_v43  ;;  %2393 = vpow2.f32 %v1985_v29  ;;  %v1340_v55 = vmul.f32 %v2180_v5, %v2760_v7 }
 0x13e   : > { %v2376_v54 = vpop.eup %2375  ;;  %v2182_v56 = vadd.f32 %v2149_v52, %v2115_v46  ;;  %v1235_v57 = vpop.f32.mrb[23].mxu0  ;;  %1617 = vst [vmem:[%s2860_s30 + $0x20] sm:$0xff] %v1585_v48  ;;  %2395 = vpow2.f32 %v1983_v33  ;;  %v1338_v59 = vmul.f32 %v2181_v51, %v2760_v7 }
 0x13f   : > { %v2378_v58 = vpop.eup %2377  ;;  %v1586_v40 = vmul.f32 %v2376_v54, %v2803_v45  ;;  %v2183_v60 = vadd.f32 %v1235_v57, %v902_v53  ;;  %1620 = vst [vmem:[%s2860_s30 + $0x38] sm:$0xff] %v1588_v38  ;;  %2397 = vpow2.f32 %v1986_v41  ;;  %v2898_v43 = vadd.f32 %v2765_v10, %v1340_v55 }
 0x140   : > { %v2380_v61 = vpop.eup %2379  ;;  %v1499_v62 = vadd.f32 1.0, %v2378_v58  ;;  %v1341_v63 = vmul.f32 %v2182_v56, %v2760_v7  ;;  %2399 = vpow2.f32 %v1984_v50  ;;  %v2903_v9 = vadd.f32 %v2765_v10, %v1338_v59  ;;  %v2118_v14 = vpop.f32.mrb[24].mxu1 }
 0x141   : > { %v2382_v8 = vpop.eup %2381  ;;  %1618 = vst [vmem:[%s2860_s30 + $0x28] sm:$0xff] %v1586_v40  ;;  %v1497_v18 = vadd.f32 1.0, %v2380_v61  ;;  %v1339_v45 = vmul.f32 %v2183_v60, %v2760_v7  ;;  %v1989_v12 = vmul.f32 -1.442695, %v2898_v43  ;;  %v2152_v21 = vpop.f32.mrb[24].mxu0 }
 0x142   : > { %v2384_v20 = vpop.eup %2383  ;;  %2401 = vrcp.f32 %v1499_v62  ;;  %v1500_v11 = vadd.f32 1.0, %v2382_v8  ;;  %v2908_v1 = vadd.f32 %v2765_v10, %v1341_v63  ;;  %v1987_v17 = vmul.f32 -1.442695, %v2903_v9  ;;  %v915_v22 = vpop.f32.mrb[25].mxu1 }
 0x143   : > { %2403 = vrcp.f32 %v1497_v18  ;;  %v1498_v16 = vadd.f32 1.0, %v2384_v20  ;;  %v2912_v19 = vadd.f32 %v2765_v10, %v1339_v45  ;;  %v2386_v24 = vpop.eup %2385  ;;  %v2184_v27 = vadd.f32 %v2152_v21, %v2118_v14  ;;  %v1248_v28 = vpop.f32.mrb[25].mxu0 }
 0x144   : > { %2405 = vrcp.f32 %v1500_v11  ;;  %v1990_v25 = vmul.f32 -1.442695, %v2908_v1  ;;  %v2119_v29 = vpop.f32.mrb[26].mxu1  ;;  %v2388_v31 = vpop.eup %2387  ;;  %v1591_v32 = vmul.f32 %v2386_v24, %v2811_v6  ;;  %v2185_v33 = vadd.f32 %v1248_v28, %v915_v22 }
 0x145   : > { %2407 = vrcp.f32 %v1498_v16  ;;  %v1988_v2 = vmul.f32 -1.442695, %v2912_v19  ;;  %v2153_v3 = vpop.f32.mrb[26].mxu0  ;;  %v918_v36 = vpop.f32.mrb[27].mxu1  ;;  %v1589_v37 = vmul.f32 %v2388_v31, %v2815_v0  ;;  %v1344_v41 = vmul.f32 %v2184_v27, %v2760_v7 }
 0x146   : > { %v2390_v4 = vpop.eup %2389  ;;  %2409 = vpow2.f32 %v1989_v12  ;;  %v2186_v5 = vadd.f32 %v2153_v3, %v2119_v29  ;;  %v1251_v42 = vpop.f32.mrb[27].mxu0  ;;  %1623 = vst [vmem:[%s2860_s30 + $0x50] sm:$0xff] %v1591_v32  ;;  %v1342_v47 = vmul.f32 %v2185_v33, %v2760_v7 }
 0x147   : > { %v2392_v46 = vpop.eup %2391  ;;  %v1592_v6 = vmul.f32 %v2390_v4, %v2820_v13  ;;  %2411 = vpow2.f32 %v1987_v17  ;;  %v2187_v48 = vadd.f32 %v1251_v42, %v918_v36  ;;  %1621 = vst [vmem:[%s2860_s30 + $0x40] sm:$0xff] %v1589_v37  ;;  %v2925_v0 = vadd.f32 %v2765_v10, %v1344_v41 }
 0x148   : > { %v2394_v50 = vpop.eup %2393  ;;  %v1590_v51 = vmul.f32 %v2392_v46, %v2824_v15  ;;  %2413 = vpow2.f32 %v1990_v25  ;;  %v1345_v52 = vmul.f32 %v2186_v5, %v2760_v7  ;;  %v2930_v13 = vadd.f32 %v2765_v10, %v1342_v47  ;;  %v2122_v58 = vpop.f32.mrb[28].mxu1 }
 0x149   : > { %v2396_v53 = vpop.eup %2395  ;;  %1624 = vst [vmem:[%s2860_s30 + $0x58] sm:$0xff] %v1592_v6  ;;  %v1503_v54 = vadd.f32 1.0, %v2394_v50  ;;  %2415 = vpow2.f32 %v1988_v2  ;;  %v1343_v38 = vmul.f32 %v2187_v48, %v2760_v7  ;;  %v1993_v15 = vmul.f32 -1.442695, %v2925_v0  ;;  %v2156_v62 = vpop.f32.mrb[28].mxu0 }
 0x14a   : > { %v2398_v55 = vpop.eup %2397  ;;  %1622 = vst [vmem:[%s2860_s30 + $0x48] sm:$0xff] %v1590_v51  ;;  %v1501_v56 = vadd.f32 1.0, %v2396_v53  ;;  %v2936_v57 = vadd.f32 %v2765_v10, %v1345_v52  ;;  %v1991_v60 = vmul.f32 -1.442695, %v2930_v13  ;;  %v931_v63 = vpop.f32.mrb[29].mxu1  ;;  %v2188_v20 = vadd.f32 %v2156_v62, %v2122_v58 }
 0x14b   : > { %v2400_v40 = vpop.eup %2399  ;;  %2417 = vrcp.f32 %v1503_v54  ;;  %v1504_v59 = vadd.f32 1.0, %v2398_v55  ;;  %v2940_v61 = vadd.f32 %v2765_v10, %v1343_v38  ;;  %v1264_v11 = vpop.f32.mrb[29].mxu0 }
 0x14c   : > { %v2402_v8 = vpop.eup %2401  ;;  %2419 = vrcp.f32 %v1501_v56  ;;  %v1502_v18 = vadd.f32 1.0, %v2400_v40  ;;  %v1994_v45 = vmul.f32 -1.442695, %v2936_v57  ;;  %v2123_v12 = vpop.f32.mrb[30].mxu1  ;;  %v2189_v21 = vadd.f32 %v1264_v11, %v931_v63 }
 0x14d   : > { %v2404_v14 = vpop.eup %2403  ;;  %v1595_v16 = vmul.f32 %v2402_v8, %v2840_v35  ;;  %2421 = vrcp.f32 %v1504_v59  ;;  %v1992_v17 = vmul.f32 -1.442695, %v2940_v61  ;;  %v2157_v22 = vpop.f32.mrb[30].mxu0  ;;  %v1348_v28 = vmul.f32 %v2188_v20, %v2760_v7 }
 0x14e   : > { %v934_v24 = vpop.f32.mrb[31].mxu1  ;;  %v2406_v25 = vpop.eup %2405  ;;  %v1593_v27 = vmul.f32 %v2404_v14, %v2844_v39  ;;  %2423 = vrcp.f32 %v1502_v18  ;;  %v2190_v29 = vadd.f32 %v2157_v22, %v2123_v12  ;;  %v1346_v2 = vmul.f32 %v2189_v21, %v2760_v7 }
 0x14f   : > { %v1267_v31 = vpop.f32.mrb[31].mxu0  ;;  %v2408_v32 = vpop.eup %2407  ;;  %1627 = vst [vmem:[%s2860_s30 + $0x70] sm:$0xff] %v1595_v16  ;;  %v1596_v35 = vmul.f32 %v2406_v25, %v2849_v44  ;;  %2425 = vpow2.f32 %v1993_v15  ;;  %v2953_v39 = vadd.f32 %v2765_v10, %v1348_v28 }
 0x150   : > { %v2191_v33 = vadd.f32 %v1267_v31, %v934_v24  ;;  %v2410_v3 = vpop.eup %2409  ;;  %1625 = vst [vmem:[%s2860_s30 + $0x60] sm:$0xff] %v1593_v27  ;;  %v1594_v36 = vmul.f32 %v2408_v32, %v2853_v49  ;;  %2427 = vpow2.f32 %v1991_v60  ;;  %v1349_v4 = vmul.f32 %v2190_v29, %v2760_v7 }
 0x151   : > { %v2412_v37 = vpop.eup %2411  ;;  %1628 = vst [vmem:[%s2860_s30 + $0x78] sm:$0xff] %v1596_v35  ;;  %v1507_v41 = vadd.f32 1.0, %v2410_v3  ;;  %2429 = vpow2.f32 %v1994_v45  ;;  %v2958_v44 = vadd.f32 %v2765_v10, %v1346_v2  ;;  %v1997_v48 = vmul.f32 -1.442695, %v2953_v39 }
 0x152   : > { %v1347_v5 = vmul.f32 %v2191_v33, %v2760_v7  ;;  %v2414_v42 = vpop.eup %2413  ;;  %1626 = vst [vmem:[%s2860_s30 + $0x68] sm:$0xff] %v1594_v36  ;;  %v1505_v46 = vadd.f32 1.0, %v2412_v37  ;;  %2431 = vpow2.f32 %v1992_v17  ;;  %v2963_v49 = vadd.f32 %v2765_v10, %v1349_v4 }
 0x153   : > { %v2416_v6 = vpop.eup %2415  ;;  %2433 = vrcp.f32 %v1507_v41  ;;  %v1508_v47 = vadd.f32 1.0, %v2414_v42  ;;  %v1995_v7 = vmul.f32 -1.442695, %v2958_v44 }
 0x154   : > { %v2967_v50 = vadd.f32 %v2765_v10, %v1347_v5  ;;  %2435 = vrcp.f32 %v1505_v46  ;;  %v1506_v51 = vadd.f32 1.0, %v2416_v6  ;;  %v1998_v53 = vmul.f32 -1.442695, %v2963_v49 }
 0x155   : > { %v2418_v52 = vpop.eup %2417  ;;  %2437 = vrcp.f32 %v1508_v47 }
 0x156   : > { %v2420_v54 = vpop.eup %2419  ;;  %v1599_v38 = vmul.f32 %v2418_v52, %v2870_v23  ;;  %2439 = vrcp.f32 %v1506_v51  ;;  %v1996_v55 = vmul.f32 -1.442695, %v2967_v50 }
 0x157   : > { %v2422_v56 = vpop.eup %2421  ;;  %v1597_v10 = vmul.f32 %v2420_v54, %v2875_v26  ;;  %2441 = vpow2.f32 %v1997_v48 }
 0x158   : > { %v2424_v15 = vpop.eup %2423  ;;  %1631 = vst [vmem:[%s2860_s30 + $0x90] sm:$0xff] %v1599_v38  ;;  %v1600_v58 = vmul.f32 %v2422_v56, %v2880_v30  ;;  %2443 = vpow2.f32 %v1995_v7 }
 0x159   : > { %v2426_v40 = vpop.eup %2425  ;;  %1629 = vst [vmem:[%s2860_s30 + $0x80] sm:$0xff] %v1597_v10  ;;  %v1598_v59 = vmul.f32 %v2424_v15, %v2884_v34  ;;  %2445 = vpow2.f32 %v1998_v53 }
 0x15a   : > { %v2428_v60 = vpop.eup %2427  ;;  %1632 = vst [vmem:[%s2860_s30 + $0x98] sm:$0xff] %v1600_v58  ;;  %v1511_v23 = vadd.f32 1.0, %v2426_v40  ;;  %2447 = vpow2.f32 %v1996_v55 }
 0x15b   : > { %v2430_v62 = vpop.eup %2429  ;;  %1630 = vst [vmem:[%s2860_s30 + $0x88] sm:$0xff] %v1598_v59  ;;  %v1509_v63 = vadd.f32 1.0, %v2428_v60 }
 0x15c   : > { %v2432_v26 = vpop.eup %2431  ;;  %2449 = vrcp.f32 %v1511_v23  ;;  %v1512_v8 = vadd.f32 1.0, %v2430_v62 }
 0x15d   : > { %v2434_v18 = vpop.eup %2433  ;;  %2451 = vrcp.f32 %v1509_v63  ;;  %v1510_v30 = vadd.f32 1.0, %v2432_v26 }
 0x15e   : > { %v2436_v45 = vpop.eup %2435  ;;  %v1603_v34 = vmul.f32 %v2434_v18, %v2898_v43  ;;  %2453 = vrcp.f32 %v1512_v8 }
 0x15f   : > { %v2438_v20 = vpop.eup %2437  ;;  %v1601_v11 = vmul.f32 %v2436_v45, %v2903_v9  ;;  %2455 = vrcp.f32 %v1510_v30 }
 0x160   : > { %v2440_v12 = vpop.eup %2439  ;;  %1635 = vst [vmem:[%s2860_s30 + $0xb0] sm:$0xff] %v1603_v34  ;;  %v1604_v14 = vmul.f32 %v2438_v20, %v2908_v1 }
 0x161   : > { %v2442_v16 = vpop.eup %2441  ;;  %1633 = vst [vmem:[%s2860_s30 + $0xa0] sm:$0xff] %v1601_v11  ;;  %v1602_v17 = vmul.f32 %v2440_v12, %v2912_v19 }
 0x162   : > { %v2444_v21 = vpop.eup %2443  ;;  %1636 = vst [vmem:[%s2860_s30 + $0xb8] sm:$0xff] %v1604_v14  ;;  %v1515_v22 = vadd.f32 1.0, %v2442_v16 }
 0x163   : > { %v2446_v24 = vpop.eup %2445  ;;  %1634 = vst [vmem:[%s2860_s30 + $0xa8] sm:$0xff] %v1602_v17  ;;  %v1513_v43 = vadd.f32 1.0, %v2444_v21 }
 0x164   : > { %v2448_v25 = vpop.eup %2447  ;;  %2457 = vrcp.f32 %v1515_v22  ;;  %v1516_v9 = vadd.f32 1.0, %v2446_v24 }
 0x165   : > { %2459 = vrcp.f32 %v1513_v43  ;;  %v1514_v27 = vadd.f32 1.0, %v2448_v25 }
 0x166   : > { %v2450_v1 = vpop.eup %2449  ;;  %2461 = vrcp.f32 %v1516_v9 }
 0x167   : > { %v2452_v19 = vpop.eup %2451  ;;  %v1607_v28 = vmul.f32 %v2450_v1, %v2925_v0  ;;  %2463 = vrcp.f32 %v1514_v27 }
 0x168   : > { %v2454_v29 = vpop.eup %2453  ;;  %v1605_v31 = vmul.f32 %v2452_v19, %v2930_v13 }
 0x169   : > { %v2456_v32 = vpop.eup %2455  ;;  %1639 = vst [vmem:[%s2860_s30 + $0xd0] sm:$0xff] %v1607_v28  ;;  %v1608_v35 = vmul.f32 %v2454_v29, %v2936_v57 }
 0x16a   : > { %1637 = vst [vmem:[%s2860_s30 + $0xc0] sm:$0xff] %v1605_v31  ;;  %v1606_v2 = vmul.f32 %v2456_v32, %v2940_v61 }
 0x16b   : > { %1640 = vst [vmem:[%s2860_s30 + $0xd8] sm:$0xff] %v1608_v35 }
 0x16c   : > { %1638 = vst [vmem:[%s2860_s30 + $0xc8] sm:$0xff] %v1606_v2 }
 0x16e   : > { %v2458_v33 = vpop.eup %2457 }
 0x16f   : > { %v2460_v0 = vpop.eup %2459  ;;  %v1611_v13 = vmul.f32 %v2458_v33, %v2953_v39 }
 0x170   : > { %v2462_v3 = vpop.eup %2461  ;;  %v1609_v36 = vmul.f32 %v2460_v0, %v2958_v44 }
 0x171   : > { %v2464_v57 = vpop.eup %2463  ;;  %1643 = vst [vmem:[%s2860_s30 + $0xf0] sm:$0xff] %v1611_v13  ;;  %v1612_v4 = vmul.f32 %v2462_v3, %v2963_v49 }
 0x172   : > { %1641 = vst [vmem:[%s2860_s30 + $0xe0] sm:$0xff] %v1609_v36  ;;  %v1610_v61 = vmul.f32 %v2464_v57, %v2967_v50 }
 0x173   : > { %1644 = vst [vmem:[%s2860_s30 + $0xf8] sm:$0xff] %v1612_v4 }
 0x174   : > { %1642 = vst [vmem:[%s2860_s30 + $0xe8] sm:$0xff] %v1610_v61 }
 0x175   : > { %2478 = shalt.err (!%p2475_p5)
}
 0x176   : > { %s2479_s14 = scalar_lea.hbm %s3005_s9, 4096  ;;  %s2483_s24 = scalar_lea.hbm %s3065_s4, 8192 }
 0x177   : > { %p2480_p6 = scmp.ne.s32.totalorder %s3005_s9, %s2479_s14  ;;  %p2484_p10 = scmp.lt.u32.totalorder %s3005_s9, %s3065_s4 }
 0x178   : > { %p2485_p11 = scmp.lt.u32.totalorder %s2483_s24, %s2479_s14  ;;  %p2487_p13 = scmp.lt.u32.totalorder %s2479_s14, %s3005_s9 }
 0x179   : > { %p2481_p7 = pnand %p2480_p6, %p2613_p4 }
 0x17a   : > { %p2486_p12 = por %p2485_p11, %p2484_p10 }
 0x17b   : > { %p2482_p9 = pneg %p2481_p7 }
 0x17c   : > { %p2488_p0 = por %p2487_p13, %p2486_p12 }
 0x17e   : > { %p2489_p1 = pnand %p2488_p0, %p2482_p9 }
 0x180   : > { %2492 = shalt.err (!%p2489_p1)
}
 0x181   : > { %s2546_s30 = smov 128   ;;  %s2547_s5 = smov 8  }
 0x182   : > { %2229 = dma.vmem_to_hbm [thread:$0]  (%p2613_p4), %s3007_s6, 4096, %s3005_s9, %s3015_s18, %s2546_s30, %s2546_s30, %s2547_s5  }
 0x183 PF: > { %p2235_p2 = scmp.ge.s32.totalorder %s2543_s20, 2  ;;  %s1678_s7 = sand.u32 1, %s2523_s15  }
 0x184   : > { %s1679_s8 = scalar_lea.sflag [#allocation3], %s1678_s7 }
 0x185   : > { %p2232_p3 = pnand %p2235_p2, %p2620_p8 }
 0x187   : > { %2518 = dma.done.wait (!%p2232_p3), %s1679_s8, 4096  }
 0x188   : > { %2520 = vsyncadd (!%p2232_p3), %s1679_s8, 4294963200  ;;  %s17_s20 = sadd.s32 1, %s2543_s20   ;;  %s3068_s15 = smov %s2527_s16 }
 0x189   : > { %p14_p5 = scmp.ge.s32.totalorder %s17_s20, 4   ;;  %s3069_s16 = smov %s2531_s17 }
 0x18a   : > { %s3070_s17 = smov %s2626_s28  ;;  %s3071_s18 = smov %s2539_s19 }
 0x18b   : > { %s3072_s19 = smov %s3074_s23  ;;  %16 = sbr.rel (!%p14_p5) target bundleno = 4 (0x4), region = 84 }
 0x192   :  { %1684 = vsyncpa [#allocation3], 1 }
 0x193   :  { %1686 = vsyncpa [#allocation3 + $0x1], 1 }

</bundles_post_ra>
